<compile_context>
chip_gen: v7x
topology: tpu7x:2x2x1
jax: 0.10.0
libtpu: 0.0.40
codegen_flags: <defaults>
</compile_context>

<pallas_src>
import functools
import math

import jax
import jax.numpy as jnp
from jax import lax
from jax.experimental import pallas as pl
from jax.experimental.pallas import tpu as pltpu

_MIB = 1024 * 1024


# --------------------------------------------------------------------------
# Kernel: one (batch, head, q-tile) block per grid point
# --------------------------------------------------------------------------
def _sdpa_kernel(q_ref, k_ref, v_ref, ctx_ref, attn_ref, *, scale):
    # q_ref: (1, 1, tq, Dk)   k_ref: (1, 1, S, Dk)   v_ref: (1, 1, S, Dv)
    # Fold 1/sqrt(d_k) into Q (tq*Dk multiplies instead of tq*S), then feed the
    # MXU bf16 operands with f32 accumulation.
    q = (q_ref[0, 0] * scale).astype(jnp.bfloat16)
    k = k_ref[0, 0].astype(jnp.bfloat16)
    v = v_ref[0, 0].astype(jnp.bfloat16)

    # scores = q @ k^T without materializing a transposed copy of K:
    # contract the last axis of q with the last axis of k on the MXU.
    scores = lax.dot_general(
        q, k,
        dimension_numbers=(((1,), (1,)), ((), ())),
        preferred_element_type=jnp.float32,
    )                                                    # (tq, S) f32

    # Numerically stable softmax over the key axis (kept in f32 on VPU/EUP).
    m = jnp.max(scores, axis=-1, keepdims=True)          # (tq, 1)
    e = jnp.exp(scores - m)                              # (tq, S)
    denom = jnp.sum(e, axis=-1, keepdims=True)           # (tq, 1)
    inv = pl.reciprocal(denom, approx=True)              # EUP slot (cheap)

    # Context from the UNnormalized probabilities so the MXU does not wait on
    # the max/sum/reciprocal chain; scale the (tq, Dv) result, not the (tq, S)
    # MXU operand.
    ctx = jnp.dot(e.astype(jnp.bfloat16), v,
                  preferred_element_type=jnp.float32)    # (tq, Dv) f32

    attn_ref[0, 0] = e * inv
    ctx_ref[0, 0] = ctx * inv


# --------------------------------------------------------------------------
# Tile / VMEM sizing helpers
# --------------------------------------------------------------------------
def _vmem_capacity_bytes():
    try:
        return int(pltpu.get_tpu_info().vmem_capacity_bytes)
    except Exception:
        return 64 * _MIB  # conservative (v7x per-TensorCore VMEM)


def _block_footprint_bytes(tq, S, Dk, Dv):
    f32 = 4
    # double-buffered BlockSpec tiles (Q, K, V, ctx, attn) ...
    dbuf = 2 * f32 * (tq * Dk + S * Dk + S * Dv + tq * Dv + tq * S)
    # ... plus in-kernel intermediates (scores / exp / bf16 copies), generous.
    inter = 3 * f32 * tq * S
    return dbuf + inter


def _select_q_tile(S, Dk, Dv):
    """Full-S tile for short sequences; otherwise the largest of {256, 128}
    whose per-step VMEM footprint fits the chip's budget (v7x has 64 MiB)."""
    if S <= 256:
        return S
    budget = int(0.8 * _vmem_capacity_bytes())
    for tq in (256, 128):
        if _block_footprint_bytes(tq, S, Dk, Dv) <= budget:
            return tq
    return 128


# --------------------------------------------------------------------------
# Wrapper
# --------------------------------------------------------------------------
def scaled_dot_product_attention(q, k, v, d_k):
    """q, k: (B, H, S, d_k)   v: (B, H, S, d_v)  ->  (context, attn)."""
    B, H, S, Dk = q.shape
    Dv = v.shape[-1]
    scale = 1.0 / math.sqrt(float(d_k))

    tq = _select_q_tile(S, Dk, Dv)
    n_q_tiles = pl.cdiv(S, tq)
    S_pad = n_q_tiles * tq
    if S_pad != S:
        # Pad the query axis so tq stays a full MXU-friendly tile; padded rows
        # are computed on zeros (finite, no NaN) and sliced off below.
        q = jnp.pad(q, ((0, 0), (0, 0), (0, S_pad - S), (0, 0)))

    footprint = _block_footprint_bytes(tq, S, Dk, Dv)
    vmem_limit = int(min(_vmem_capacity_bytes() - 4 * _MIB,
                         max(32 * _MIB, int(1.3 * footprint) + 2 * _MIB)))

    kernel = functools.partial(_sdpa_kernel, scale=scale)
    ctx, attn = pl.pallas_call(
        kernel,
        out_shape=(
            jax.ShapeDtypeStruct((B, H, S_pad, Dv), jnp.float32),  # context
            jax.ShapeDtypeStruct((B, H, S_pad, S), jnp.float32),   # attn
        ),
        grid_spec=pltpu.PrefetchScalarGridSpec(
            num_scalar_prefetch=0,
            grid=(B, H, n_q_tiles),
            in_specs=[
                pl.BlockSpec((1, 1, tq, Dk), lambda b, h, i: (b, h, i, 0)),
                pl.BlockSpec((1, 1, S, Dk), lambda b, h, i: (b, h, 0, 0)),
                pl.BlockSpec((1, 1, S, Dv), lambda b, h, i: (b, h, 0, 0)),
            ],
            out_specs=(
                pl.BlockSpec((1, 1, tq, Dv), lambda b, h, i: (b, h, i, 0)),
                pl.BlockSpec((1, 1, tq, S), lambda b, h, i: (b, h, i, 0)),
            ),
        ),
        compiler_params=pltpu.CompilerParams(
            # q-tile axis "arbitrary": megacore sharding (v7x) happens over
            # batch/head so each core DMAs a given head's K/V only once.
            dimension_semantics=("parallel", "parallel", "arbitrary"),
            vmem_limit_bytes=vmem_limit,
        ),
    )(q, k, v)

    if S_pad != S:
        ctx = ctx[:, :, :S, :]
        attn = attn[:, :, :S, :]
    return ctx, attn


# --------------------------------------------------------------------------
# Pure-JAX reference (for verification)
# --------------------------------------------------------------------------
def sdpa_reference(q, k, v, d_k):
    scores = jnp.einsum("bhqd,bhkd->bhqk", q, k) / jnp.sqrt(jnp.float32(d_k))
    attn = jax.nn.softmax(scores, axis=-1)
    ctx = jnp.einsum("bhqk,bhkd->bhqd", attn, v)
    return ctx, attn


if __name__ == "__main__":
    # small shapes consistent with the module (per-head attention inputs)
    B, H, S, d_k, d_v = 2, 4, 8, 16, 16

    key = jax.random.PRNGKey(0)
    kq, kk, kv = jax.random.split(key, 3)
    Q = jax.random.normal(kq, (B, H, S, d_k), jnp.float32)
    K = jax.random.normal(kk, (B, H, S, d_k), jnp.float32)
    V = jax.random.normal(kv, (B, H, S, d_v), jnp.float32)

    context, attn = scaled_dot_product_attention(Q, K, V, d_k)
    context = jax.block_until_ready(context)
    attn = jax.block_until_ready(attn)

    ref_ctx, ref_attn = sdpa_reference(Q, K, V, d_k)

    assert context.shape == (B, H, S, d_v)
    assert attn.shape == (B, H, S, S)
    # Tolerances relaxed vs. the all-f32 version because the matmul operands
    # are fed to the MXU in bf16 (f32 accumulation) and the softmax reciprocal
    # uses the approximate EUP path; outputs remain f32.
    assert jnp.allclose(attn, ref_attn, atol=3e-2, rtol=3e-2), "attn mismatch"
    assert jnp.allclose(context, ref_ctx, atol=6e-2, rtol=6e-2), "context mismatch"

    print("KERNEL_OK")
</pallas_src>

<mosaic_0001>
module attributes {stable_mosaic.version = 11 : i64} {
  func.func @_sdpa_kernel(%arg0: i32, %arg1: i32, %arg2: i32, %arg3: memref<1x1x8x16xf32, #tpu.memory_space<vmem>>, %arg4: memref<1x1x8x16xf32, #tpu.memory_space<vmem>>, %arg5: memref<1x1x8x16xf32, #tpu.memory_space<vmem>>, %arg6: memref<1x1x8x16xf32, #tpu.memory_space<vmem>>, %arg7: memref<1x1x8x8xf32, #tpu.memory_space<vmem>>) attributes {dimension_semantics = [#tpu.dimension_semantics<parallel>, #tpu.dimension_semantics<parallel>, #tpu.dimension_semantics<arbitrary>], iteration_bounds = array<i64: 2, 4, 1>, scalar_prefetch = 0 : i64, scratch_operands = 0 : i64, tpu.core_type = #tpu.core_type<tc>, window_params = [{transform_indices = @transform_0, window_bounds = array<i64: 1, 1, 8, 16>}, {transform_indices = @transform_1, window_bounds = array<i64: 1, 1, 8, 16>}, {transform_indices = @transform_2, window_bounds = array<i64: 1, 1, 8, 16>}, {transform_indices = @transform_3, window_bounds = array<i64: 1, 1, 8, 16>}, {transform_indices = @transform_4, window_bounds = array<i64: 1, 1, 8, 8>}]} {
    %c0 = arith.constant 0 : index
    %c0_0 = arith.constant 0 : index
    %c0_1 = arith.constant 0 : index
    %c0_2 = arith.constant 0 : index
    %0 = vector.load %arg3[%c0, %c0_0, %c0_1, %c0_2] : memref<1x1x8x16xf32, #tpu.memory_space<vmem>>, vector<1x1x8x16xf32>
    %1 = vector.shape_cast %0 : vector<1x1x8x16xf32> to vector<8x16xf32>
    %cst = arith.constant 2.500000e-01 : f32
    %2 = vector.broadcast %cst : f32 to vector<8x16xf32>
    %3 = arith.mulf %1, %2 : vector<8x16xf32>
    %4 = arith.truncf %3 : vector<8x16xf32> to vector<8x16xbf16>
    %c0_3 = arith.constant 0 : index
    %c0_4 = arith.constant 0 : index
    %c0_5 = arith.constant 0 : index
    %c0_6 = arith.constant 0 : index
    %5 = vector.load %arg4[%c0_3, %c0_4, %c0_5, %c0_6] : memref<1x1x8x16xf32, #tpu.memory_space<vmem>>, vector<1x1x8x16xf32>
    %6 = vector.shape_cast %5 : vector<1x1x8x16xf32> to vector<8x16xf32>
    %7 = arith.truncf %6 : vector<8x16xf32> to vector<8x16xbf16>
    %c0_7 = arith.constant 0 : index
    %c0_8 = arith.constant 0 : index
    %c0_9 = arith.constant 0 : index
    %c0_10 = arith.constant 0 : index
    %8 = vector.load %arg5[%c0_7, %c0_8, %c0_9, %c0_10] : memref<1x1x8x16xf32, #tpu.memory_space<vmem>>, vector<1x1x8x16xf32>
    %9 = vector.shape_cast %8 : vector<1x1x8x16xf32> to vector<8x16xf32>
    %10 = arith.truncf %9 : vector<8x16xf32> to vector<8x16xbf16>
    %cst_11 = arith.constant dense<0.000000e+00> : vector<8x8xf32>
    %11 = tpu.matmul %4, %7, %cst_11 {dimension_numbers = #tpu.dot_dimension_numbers<[1], [1], [0], [0], [0, 0, 1, 0], [], []>} : vector<8x16xbf16>, vector<8x16xbf16>, vector<8x8xf32> -> vector<8x8xf32>
    %cst_12 = arith.constant dense<0xFF800000> : vector<8xf32>
    %12 = vector.multi_reduction <maximumf>, %11, %cst_12 [1] : vector<8x8xf32> to vector<8xf32>
    %13 = vector.shape_cast %12 : vector<8xf32> to vector<8x1xf32>
    %14 = vector.broadcast %13 : vector<8x1xf32> to vector<8x8xf32>
    %15 = arith.subf %11, %14 : vector<8x8xf32>
    %16 = math.exp %15 : vector<8x8xf32>
    %cst_13 = arith.constant dense<0.000000e+00> : vector<8xf32>
    %17 = vector.multi_reduction <add>, %16, %cst_13 [1] : vector<8x8xf32> to vector<8xf32>
    %18 = vector.shape_cast %17 : vector<8xf32> to vector<8x1xf32>
    %19 = tpu.reciprocal %18 {approx = true} : vector<8x1xf32> -> vector<8x1xf32>
    %20 = arith.truncf %16 : vector<8x8xf32> to vector<8x8xbf16>
    %cst_14 = arith.constant dense<0.000000e+00> : vector<8x16xf32>
    %21 = tpu.matmul %20, %10, %cst_14 {dimension_numbers = #tpu.dot_dimension_numbers<[1], [0], [0], [1], [0, 0, 1, 1], [], []>} : vector<8x8xbf16>, vector<8x16xbf16>, vector<8x16xf32> -> vector<8x16xf32>
    %22 = vector.broadcast %19 : vector<8x1xf32> to vector<8x8xf32>
    %23 = arith.mulf %16, %22 : vector<8x8xf32>
    %c0_15 = arith.constant 0 : index
    %c0_16 = arith.constant 0 : index
    %c0_17 = arith.constant 0 : index
    %c0_18 = arith.constant 0 : index
    %24 = vector.load %arg7[%c0_15, %c0_16, %c0_17, %c0_18] : memref<1x1x8x8xf32, #tpu.memory_space<vmem>>, vector<1x1x8x8xf32>
    %25 = vector.shape_cast %24 : vector<1x1x8x8xf32> to vector<8x8xf32>
    %26 = vector.shape_cast %23 : vector<8x8xf32> to vector<1x1x8x8xf32>
    tpu.vector_store %arg7[%c0_15, %c0_16, %c0_17, %c0_18], %26 {strides = array<i32>} : memref<1x1x8x8xf32, #tpu.memory_space<vmem>>, vector<1x1x8x8xf32>,
    %27 = vector.broadcast %19 : vector<8x1xf32> to vector<8x16xf32>
    %28 = arith.mulf %21, %27 : vector<8x16xf32>
    %c0_19 = arith.constant 0 : index
    %c0_20 = arith.constant 0 : index
    %c0_21 = arith.constant 0 : index
    %c0_22 = arith.constant 0 : index
    %29 = vector.load %arg6[%c0_19, %c0_20, %c0_21, %c0_22] : memref<1x1x8x16xf32, #tpu.memory_space<vmem>>, vector<1x1x8x16xf32>
    %30 = vector.shape_cast %29 : vector<1x1x8x16xf32> to vector<8x16xf32>
    %31 = vector.shape_cast %28 : vector<8x16xf32> to vector<1x1x8x16xf32>
    tpu.vector_store %arg6[%c0_19, %c0_20, %c0_21, %c0_22], %31 {strides = array<i32>} : memref<1x1x8x16xf32, #tpu.memory_space<vmem>>, vector<1x1x8x16xf32>,
    return
  }
  func.func @transform_0(%arg0: i32, %arg1: i32, %arg2: i32) -> (i32, i32, i32, i32) {
    %c0_i32 = arith.constant 0 : i32
    %c0_i32_0 = arith.constant 0 : i32
    return %arg0, %arg1, %arg2, %c0_i32 : i32, i32, i32, i32
  }
  func.func @transform_1(%arg0: i32, %arg1: i32, %arg2: i32) -> (i32, i32, i32, i32) {
    %c0_i32 = arith.constant 0 : i32
    %c0_i32_0 = arith.constant 0 : i32
    %c0_i32_1 = arith.constant 0 : i32
    return %arg0, %arg1, %c0_i32, %c0_i32_0 : i32, i32, i32, i32
  }
  func.func @transform_2(%arg0: i32, %arg1: i32, %arg2: i32) -> (i32, i32, i32, i32) {
    %c0_i32 = arith.constant 0 : i32
    %c0_i32_0 = arith.constant 0 : i32
    %c0_i32_1 = arith.constant 0 : i32
    return %arg0, %arg1, %c0_i32, %c0_i32_0 : i32, i32, i32, i32
  }
  func.func @transform_3(%arg0: i32, %arg1: i32, %arg2: i32) -> (i32, i32, i32, i32) {
    %c0_i32 = arith.constant 0 : i32
    %c0_i32_0 = arith.constant 0 : i32
    return %arg0, %arg1, %arg2, %c0_i32 : i32, i32, i32, i32
  }
  func.func @transform_4(%arg0: i32, %arg1: i32, %arg2: i32) -> (i32, i32, i32, i32) {
    %c0_i32 = arith.constant 0 : i32
    %c0_i32_0 = arith.constant 0 : i32
    return %arg0, %arg1, %arg2, %c0_i32 : i32, i32, i32, i32
  }
}

</mosaic_0001>

<bundles_post_ra>
// kernel: tpu_custom_call.1
= control target key start
LH: loop header
LB: loop body
LE: loop exit
PB: predicated region body
PF: predicated region fallthrough
CT: control target
= control target key end

     0   :  { %s1397_s0 = inlined_call_operand.hbm [shape: f32[2,4,8,16], index: 0, kind: input, shape index: {}]   ;;  %s1398_s1 = inlined_call_operand.hbm [shape: f32[2,4,8,16], index: 1, kind: input, shape index: {}]   ;;  %s1399_s2 = inlined_call_operand.hbm [shape: f32[2,4,8,16], index: 2, kind: input, shape index: {}]   ;;  %s1400_s3 = inlined_call_operand.hbm [shape: f32[2,4,8,16], index: 3, kind: output, shape index: {0}]   ;;  %s1401_s4 = inlined_call_operand.hbm [shape: f32[2,4,8,8], index: 4, kind: output, shape index: {1}]  }
   0x1   :  { %1412 = sst [smem:[#allocation22_spill]] %s1398_s1 }
   0x2   :  { %10 = vsyncpa [#allocation3], 0 }
   0x3   :  { %12 = vsyncpa [#allocation3 + $0x1], 0 }
   0x4   :  { %13 = vsyncpa [#allocation6], 0 }
   0x5   :  { %15 = vsyncpa [#allocation6 + $0x1], 0 }
   0x6   :  { %16 = vsyncpa [#allocation4], 0 }
   0x7   :  { %18 = vsyncpa [#allocation4 + $0x1], 0 }
   0x8   :  { %19 = vsyncpa [#allocation10], 0 }
   0x9   :  { %21 = vsyncpa [#allocation10 + $0x1], 0  ;;  %s1067_s15 = smov 0   ;;  %s1069_s16 = smov 0  }
   0xa   :  { %s1071_s17 = smov 0   ;;  %s1073_s18 = smov 0  }
   0xb   :  { %s1075_s19 = smov 0   ;;  %s1077_s20 = smov 0  }
   0xc   :  { %s1079_s21 = smov 0   ;;  %s1081_s22 = smov 0  }
   0xd LB: > { %1413 = sst [smem:[#allocation15_spill]] %s1005_s15  ;;  %s1108_s23 = sadd.s32 4294967295, %s1033_s22   ;;  %s1033_s22 = sphi %s1081_s22, %s27_s22   ;;  %s1029_s21 = sphi %s1079_s21, %s1442_s21   ;;  %s1025_s20 = sphi %s1077_s20, %s1441_s20   ;;  %s1021_s19 = sphi %s1075_s19, %s1440_s19   ;;  %s1017_s18 = sphi %s1073_s18, %s1439_s18   ;;  %s1013_s17 = sphi %s1071_s17, %s1445_s17   ;;  %s1009_s16 = sphi %s1069_s16, %s1444_s16   ;;  %s1005_s15 = sphi %s1067_s15, %s1443_s15  }
   0xe   : > { %1414 = sst [smem:[#allocation16_spill]] %s1025_s20  ;;  %s666_s24 = sadd.s32 4294967294, %s1033_s22  }
   0xf   : > { %1415 = sst [smem:[#allocation17_spill]] %s1029_s21  ;;  %s42_s25 = sadd.s32 1, %s1025_s20 }
  0x10   : > { %s46_s26 = sadd.s32 1, %s1029_s21  ;;  %p44_p0 = scmp.ge.s32.totalorder %s42_s25, 4 }
  0x11   : > { %s57_s27 = sadd.s32 1, %s1013_s17  ;;  %p64_p1 = scmp.ne.s32.totalorder %s1013_s17, %s1009_s16 }
  0x12   : > { %p65_p2 = scmp.eq.s32.totalorder %s1033_s22, 0  ;;  %s1447_s25 = smov (%p44_p0, %s42_s25), 0 }
  0x13   : > { %1416 = sst [smem:[#allocation18_spill]] %s1447_s25  ;;  %s1449_s26 = smov (!%p44_p0, %s46_s26), %s1029_s21 }
  0x14   : > { %s51_s28 = ssub.s32 %s1025_s20, %s1447_s25  ;;  %p1122_p3 = por %p65_p2, %p64_p1 }
  0x15   : > { %p48_p4 = scmp.ge.s32.totalorder %s1449_s26, 2  ;;  %p70_p5 = scmp.ne.s32.totalorder %s1009_s16, %s1005_s15 }
  0x16   : > { %p71_p6 = scmp.eq.s32.totalorder %s1108_s23, 0  ;;  %p154_p7 = scmp.eq.s32.totalorder %s1108_s23, 7 }
  0x17   : > { %s1451_s26 = smov (%p48_p4, %s1449_s26), 0  ;;  %p160_p10 = scmp.eq.s32.totalorder %s666_s24, 7 }
  0x18   : > { %1418 = sst [smem:[#allocation19_spill]] %s1451_s26  ;;  %p1132_p8 = por %p71_p6, %p70_p5 }
  0x19   : > { %p1136_p9 = por %p154_p7, %p64_p1  ;;  %s50_s6 = ssub.s32 %s1029_s21, %s1451_s26 }
  0x1a   : > { %s1419_s30 = scalar_select %p1132_p8, 1, 0 }
  0x1b   : > { %s1420_s5 = scalar_select %p1136_p9, 1, 0 }
  0x1c   : > { %s52_s7 = sor.u32 %s51_s28, %s50_s6  ;;  %p1142_p12 = por %p160_p10, %p70_p5 }
  0x1d   : > { %p55_p11 = scmp.eq.s32.totalorder %s52_s7, 0  ;;  %p737_p13 = scmp.lt.s32.totalorder %s1033_s22, 8 }
  0x1e   : > { %s1421_s8 = scalar_select %p1142_p12, 1, 0 }
  0x1f   : > { %s1402_s9 = sand.u32 1, %s1013_s17   ;;  %s670_s12 = sshll.u32 %s1029_s21, 2 }
  0x20   : > { %1422 = sst [smem:[#allocation20_spill]] %s1421_s8  ;;  %s1153_s11 = sshll.u32 %s1402_s9, 3 }
  0x21   : > { %s1149_s10 = scalar_select %p55_p11, %s1013_s17, %s57_s27  }
  0x22   : > { %s220_s13 = sadd.s32 %s1025_s20, %s670_s12  ;;  %p1159_p0 = pnand %p737_p13, %p1122_p3 }
  0x23   : > { %1423 = sst [smem:[#allocation21_spill]] %s1149_s10  ;;  %s1163_s24 = sshll.u32 %s220_s13, 7 }
  0x24   : > { %s1424_s14 = scalar_select %p1159_p0, 1, 0 }
  0x25   : > { %s231_s28 = sand.u32 1, %s1033_s22   ;;  %s1425_s1 = sld [smem:[#allocation22_spill]] }
  0x26   : > { %s235_s12 = scalar_lea.vmem [#allocation5], %s1153_s11  ;;  %s1177_s9 = scalar_lea.sflag [#allocation6], %s231_s28 }
  0x27   : > { %s244_s29 = sshll.u32 %s235_s12, 4  ;;  %p1183_p4 = pneg %p1159_p0  ;;  %s1174_s29 = int_to_ptr.vmem [resolvable:$true] %s244_s29 }
  0x2b   : > { %s1170_s27 = scalar_lea.hbm %s1425_s1, %s1163_s24  ;;  %s814_s12 = scalar_lea.hbm %s1425_s1, 1024 }
  0x2c   : > { %s809_s13 = scalar_lea.hbm %s1170_s27, 128  ;;  %p815_p7 = scmp.lt.u32.totalorder %s1170_s27, %s1425_s1 }
  0x2d   : > { %p810_p3 = scmp.ne.s32.totalorder %s1170_s27, %s809_s13  ;;  %p816_p10 = scmp.lt.u32.totalorder %s814_s12, %s809_s13 }
  0x2e   : > { %p818_p13 = scmp.lt.u32.totalorder %s809_s13, %s1170_s27 }
  0x2f   : > { %p812_p5 = pnand %p1183_p4, %p810_p3  ;;  %p817_p11 = por %p816_p10, %p815_p7 }
  0x31   : > { %p813_p6 = pneg %p812_p5  ;;  %p819_p1 = por %p818_p13, %p817_p11 }
  0x33   : > { %p820_p2 = pnand %p819_p1, %p813_p6 }
  0x35   : > { %823 = shalt.err (!%p820_p2)
}
  0x36   : > { %s824_s28 = scalar_lea.vmem %s1174_s29, 128  ;;  %s1035_s6 = smov [#allocation5]  }
  0x37   : > { %p825_p3 = scmp.ne.s32.totalorder %s1174_s29, %s824_s28  ;;  %s829_s7 = sshll.u32 %s1035_s6, 4  ;;  %s830_s7 = int_to_ptr.vmem [resolvable:$false] %s829_s7 }
  0x38   : > { %s831_s21 = scalar_lea.vmem %s830_s7, 256  ;;  %p832_p9 = scmp.lt.s32.totalorder %s1174_s29, %s830_s7 }
  0x39   : > { %p827_p5 = pnand %p825_p3, %p1183_p4  ;;  %p833_p8 = scmp.lt.s32.totalorder %s831_s21, %s824_s28 }
  0x3b   : > { %p828_p12 = pneg %p827_p5  ;;  %p834_p7 = por %p833_p8, %p832_p9 }
  0x3d   : > { %p835_p10 = pnand %p834_p7, %p828_p12 }
  0x3f   : > { %838 = shalt.err (!%p835_p10)
}
  0x40   : > { %726 = dma.hbm_to_vmem [thread:$0]  (!%p1159_p0), %s1170_s27, 128, %s1174_s29, %s1177_s9  }
  0x41   : > { %p1427_p1 = scmp.lt.s32.totalorder %s1033_s22, 9  ;;  %p1428_p2 = scmp.ge.s32.totalorder %s1033_s22, 1 }
  0x42   : > { %s1219_s28 = scalar_lea.hbm %s1397_s0, %s1163_s24  ;;  %s214_s6 = scalar_lea.vmem [#allocation2], %s1153_s11 }
  0x43   : > { %p1211_p6 = pnand %p1428_p2, %p1427_p1  ;;  %s224_s7 = sshll.u32 %s214_s6, 4  ;;  %s1222_s7 = int_to_ptr.vmem [resolvable:$true] %s224_s7 }
  0x44   : > { %s1228_s21 = scalar_lea.hbm %s1399_s2, %s1163_s24  ;;  %s1430_s1 = sand.u32 1, %s1013_s17  }
  0x45   : > { %s1429_s25 = scalar_select %p1211_p6, 1, 0 }
  0x46   : > { %s211_s20 = scalar_lea.sflag [#allocation3], %s1430_s1  ;;  %s839_s10 = scalar_lea.hbm %s1219_s28, 128 }
  0x47   : > { %p840_p8 = scmp.ne.s32.totalorder %s1219_s28, %s839_s10  ;;  %s844_s8 = scalar_lea.hbm %s1397_s0, 1024 }
  0x48   : > { %p845_p11 = scmp.lt.u32.totalorder %s1219_s28, %s1397_s0  ;;  %p846_p13 = scmp.lt.u32.totalorder %s844_s8, %s839_s10 }
  0x49   : > { %p842_p9 = pnand %p840_p8, %p1183_p4  ;;  %p848_p5 = scmp.lt.u32.totalorder %s839_s10, %s1219_s28 }
  0x4a   : > { %p847_p3 = por %p846_p13, %p845_p11 }
  0x4b   : > { %p843_p12 = pneg %p842_p9 }
  0x4c   : > { %p849_p7 = por %p848_p5, %p847_p3 }
  0x4e   : > { %p850_p10 = pnand %p849_p7, %p843_p12 }
  0x50   : > { %853 = shalt.err (!%p850_p10)
}
  0x51   : > { %s854_s1 = scalar_lea.vmem %s1222_s7, 128  ;;  %s1036_s24 = smov [#allocation2]  }
  0x52   : > { %p855_p1 = scmp.ne.s32.totalorder %s1222_s7, %s854_s1  ;;  %s859_s27 = sshll.u32 %s1036_s24, 4  ;;  %s860_s27 = int_to_ptr.vmem [resolvable:$false] %s859_s27 }
  0x53   : > { %s861_s15 = scalar_lea.vmem %s860_s27, 256  ;;  %p862_p9 = scmp.lt.s32.totalorder %s1222_s7, %s860_s27 }
  0x54   : > { %p857_p2 = pnand %p855_p1, %p1183_p4  ;;  %p863_p6 = scmp.lt.s32.totalorder %s861_s15, %s854_s1 }
  0x56   : > { %p858_p8 = pneg %p857_p2  ;;  %p864_p11 = por %p863_p6, %p862_p9 }
  0x58   : > { %p865_p13 = pnand %p864_p11, %p858_p8 }
  0x5a   : > { %868 = shalt.err (!%p865_p13)
}
  0x5b   : > { %723 = dma.hbm_to_vmem [thread:$0]  (!%p1159_p0), %s1219_s28, 128, %s1222_s7, %s211_s20  }
  0x5c   : > { %s255_s8 = scalar_lea.vmem [#allocation7], %s1153_s11  ;;  %s869_s29 = scalar_lea.hbm %s1228_s21, 128 }
  0x5d   : > { %s264_s10 = sshll.u32 %s255_s8, 4  ;;  %p870_p12 = scmp.ne.s32.totalorder %s1228_s21, %s869_s29  ;;  %s265_s10 = int_to_ptr.vmem [resolvable:$true] %s264_s10 }
  0x5e   : > { %s874_s6 = scalar_lea.hbm %s1399_s2, 1024  ;;  %p875_p5 = scmp.lt.u32.totalorder %s1228_s21, %s1399_s2 }
  0x5f   : > { %p872_p6 = pnand %p870_p12, %p1183_p4  ;;  %p876_p7 = scmp.lt.u32.totalorder %s874_s6, %s869_s29 }
  0x60   : > { %p878_p1 = scmp.lt.u32.totalorder %s869_s29, %s1228_s21 }
  0x61   : > { %p873_p3 = pneg %p872_p6  ;;  %p877_p10 = por %p876_p7, %p875_p5 }
  0x63   : > { %p879_p2 = por %p878_p1, %p877_p10 }
  0x65   : > { %p880_p8 = pnand %p879_p2, %p873_p3 }
  0x67   : > { %883 = shalt.err (!%p880_p8)
}
  0x68   : > { %s884_s20 = scalar_lea.vmem %s265_s10, 128  ;;  %s1037_s11 = smov [#allocation7]  }
  0x69   : > { %p885_p9 = scmp.ne.s32.totalorder %s265_s10, %s884_s20  ;;  %s889_s28 = sshll.u32 %s1037_s11, 4  ;;  %s890_s28 = int_to_ptr.vmem [resolvable:$false] %s889_s28 }
  0x6a   : > { %s891_s7 = scalar_lea.vmem %s890_s28, 256  ;;  %p892_p12 = scmp.lt.s32.totalorder %s265_s10, %s890_s28 }
  0x6b   : > { %p887_p11 = pnand %p885_p9, %p1183_p4  ;;  %p893_p6 = scmp.lt.s32.totalorder %s891_s7, %s884_s20 }
  0x6d   : > { %p888_p13 = pneg %p887_p11  ;;  %p894_p0 = por %p893_p6, %p892_p12 }
  0x6f   : > { %p895_p5 = pnand %p894_p0, %p888_p13 }
  0x71   : > { %898 = shalt.err (!%p895_p5)
}
  0x72   : > { %p1431_p7 = scmp.ne.s32.totalorder %s1424_s14, 0  ;;  %p1432_p3 = scmp.ne.s32.totalorder %s1429_s25, 0 }
  0x73   : > { %s1275_s26 = sand.u32 (!%p1432_p3), 1, %s1009_s16   ;;  %p1433_p0 = scmp.ne.s32.totalorder (!%p1432_p3), %s1419_s30, 0 }
  0x74   : > { %729 = dma.hbm_to_vmem [thread:$0]  (!%p1431_p7), %s1228_s21, 128, %s265_s10, %s1177_s9  }
  0x75   : > { %273 = sbr.rel (%p1432_p3) target bundleno = 739 (0x2e3), region = 32  ;;  %s1278_s27 = sshll.u32 (!%p1432_p3), %s1275_s26, 3 }
  0x76   : > { %s276_s15 = scalar_lea.sflag (!%p1432_p3), [#allocation3], %s1275_s26  ;;  %s279_s8 = scalar_lea.vmem (!%p1432_p3), [#allocation2], %s1278_s27 }
  0x7c   : > { %988 = dma.done.wait (%p1433_p0), %s276_s15, 128  }
  0x7d   : > { %990 = vsyncadd (%p1433_p0), %s276_s15, 4294967168  ;;  %s284_s9 = sand.u32 1, %s1108_s23   ;;  %s288_s25 = scalar_lea.vmem [#allocation5], %s1278_s27 }
  0x7e   : > { %s285_s14 = scalar_lea.sflag [#allocation6], %s284_s9 }
  0x7f   : > { %992 = dma.done.wait (%p1433_p0), %s285_s14, 256  }
  0x80   : > { %994 = vsyncadd (%p1433_p0), %s285_s14, 4294967040  ;;  %v1038_v0 = vmov 0.0   ;;  %vm1039_vm0 = vmmov 0   ;;  %v341_v1 = vld [vmem:[%s288_s25] sm:$0xff]  ;;  %vm345_vm1 = vcmask 130048   ;;  %v338_v2 = vld [vmem:[%s279_s8] sm:$0xff] }
  0x81   : > { %698 = vmatprep.subr.bf16.mxu0 %v1038_v0  ;;  %700 = vmatprep.mubr.msk.bf16.mxu0 %vm1039_vm0, %v1038_v0  ;;  %v342_v3 = vpack.c.bf16 %v341_v1, %v341_v1  ;;  %v339_v5 = vmul.f32 0.25, %v338_v2  ;;  %vm392_vm2 = vcmask 64512   ;;  %s297_s23 = scalar_lea.vmem [#allocation7], %s1278_s27  ;;  %vm407_vm3 = vcmask 1043456   ;;  %s688_s30 = sshll.u32 %s1021_s19, 2 }
  0x82   : > { %704 = vmatprep.subr.bf16.mxu1 %v1038_v0  ;;  %706 = vmatprep.mubr.msk.bf16.mxu1 %vm1039_vm0, %v1038_v0  ;;  %v343_v12 = vld [vmem:[%s297_s23] sm:$0xff]  ;;  %s1300_s21 = sadd.s32 %s1017_s18, %s688_s30  ;;  %s336_s29 = scalar_lea.vmem [#allocation9], %s1278_s27 }
  0x83   : > { %v350_v4 = vsel %vm345_vm1, %v342_v3, 0  ;;  %v340_v6 = vpack.c.bf16 %v339_v5, %v339_v5  ;;  %v344_v13 = vpack.c.bf16 %v343_v12, %v343_v12  ;;  %s689_s10 = sshll.u32 %s1300_s21, 7  ;;  %s493_s13 = sshll.u32 %s336_s29, 4  ;;  %s1311_s13 = int_to_ptr.vmem [resolvable:$true] %s493_s13 }
  0x84   : > { %699 = vmatpush3.bf16.xpose.msra.mxu0 %v350_v4  ;;  %s1309_s1 = scalar_lea.hbm %s1401_s4, %s689_s10  ;;  %s461_s18 = scalar_lea.sflag [#allocation10], %s1275_s26 }
  0x85   : > { %v409_v14 = vsel %vm407_vm3, %v344_v13, 0  ;;  %s899_s19 = scalar_lea.vmem %s1311_s13, 128  ;;  %p1434_p10 = scmp.ne.s32.totalorder %s1420_s5, 0 }
  0x86   : > { %705 = vmatpush3.bf16.msra.mxu1 %v409_v14  ;;  %p900_p4 = scmp.ne.s32.totalorder %s1311_s13, %s899_s19  ;;  %s1040_s24 = smov [#allocation9]  }
  0x87   : > { %s903_s20 = sshll.u32 %s1040_s24, 4  ;;  %s904_s20 = int_to_ptr.vmem [resolvable:$false] %s903_s20 }
  0x88   : > { %p901_p1 = pnand %p900_p4, %p1434_p10  ;;  %s905_s11 = scalar_lea.vmem %s904_s20, 256 }
  0x89   : > { %p906_p8 = scmp.lt.s32.totalorder %s1311_s13, %s904_s20  ;;  %p907_p9 = scmp.lt.s32.totalorder %s905_s11, %s899_s19 }
  0x8a   : > { %p902_p2 = pneg %p901_p1 }
  0x8b   : > { %701 = vmatmul.mubr.msk.bf16.vlgmr.msra.gmra.mrb[0].mxu0 %vm345_vm1, %v340_v6  ;;  %p908_p11 = por %p907_p9, %p906_p8 }
  0x8d   : > { %p909_p13 = pnand %p908_p11, %p902_p2 }
 0x15e   : > { %v386_v7 = vpop.f32.mrb[0].mxu0 }
 0x15f   : > { %v702_v8 = vpop.f32.mrb[1].mxu0  ;;  %v393_v9 = vsel %vm392_vm2, %v386_v7, -inf }
 0x160   : > { %394 = vmax.xlane.f32.xlu0 %v393_v9  ;;  %v389_v10 = vpop.f32.mrb[2].mxu0 }
 0x161   : > { %v703_v11 = vpop.f32.mrb[3].mxu0 }
 0x1ed   : > { %v395_v15 = vpop.xlane.xlu0 %394 }
 0x1ee   : > { %v396_v16 = vsub.f32 %v386_v7, %v395_v15 }
 0x1f0   : > { %v397_v17 = vmul.f32 1.442695, %v396_v16 }
 0x1f2   : > { %805 = vpow2.f32 %v397_v17 }
 0x1fc   : > { %v806_v18 = vpop.eup %805 }
 0x1fd   : > { %v399_v19 = vsel %vm392_vm2, %v806_v18, 0.0  ;;  %v403_v20 = vpack.c.bf16 %v806_v18, %v806_v18 }
 0x1fe   : > { %400 = vadd.xlane.f32.xlu0 %v399_v19 }
 0x1ff   : > { %707 = vmatmul.mubr.msk.bf16.vlgmr.msra.gmra.mrb[0].mxu1 %vm392_vm2, %v403_v20 }
 0x28b   : > { %v401_v21 = vpop.xlane.xlu0 %400 }
 0x28c   : > { %807 = vrcp.f32 %v401_v21 }
 0x296   : > { %v808_v22 = vpop.eup %807 }
 0x297   : > { %v451_v23 = vmul.f32 %v808_v22, %v806_v18 }
 0x299   : > { %452 = vst.msk [vmem:[%s336_s29] sm:$0xff] %vm392_vm2, %v451_v23 }
 0x29a   : > { %912 = shalt.err (!%p909_p13)
}
 0x29b   : > { %s913_s28 = scalar_lea.hbm %s1309_s1, 128  ;;  %s917_s8 = scalar_lea.hbm %s1401_s4, 1024 }
 0x29c   : > { %p914_p12 = scmp.ne.s32.totalorder %s1309_s1, %s913_s28  ;;  %p918_p7 = scmp.lt.u32.totalorder %s1309_s1, %s1401_s4 }
 0x29d   : > { %p919_p3 = scmp.lt.u32.totalorder %s917_s8, %s913_s28  ;;  %p921_p4 = scmp.lt.u32.totalorder %s913_s28, %s1309_s1 }
 0x29e   : > { %p915_p6 = pnand %p914_p12, %p1434_p10 }
 0x29f   : > { %p920_p0 = por %p919_p3, %p918_p7 }
 0x2a0   : > { %p916_p5 = pneg %p915_p6 }
 0x2a1   : > { %p922_p1 = por %p921_p4, %p920_p0 }
 0x2a3   : > { %p923_p2 = pnand %p922_p1, %p916_p5 }
 0x2a5   : > { %926 = shalt.err (!%p923_p2)
}
 0x2a6   : > { %717 = dma.vmem_to_hbm [thread:$0]  (%p1434_p10), %s1311_s13, 128, %s1309_s1, %s461_s18  }
 0x2a7   : > { %s329_s25 = scalar_lea.vmem [#allocation8], %s1278_s27  ;;  %s1342_s12 = scalar_lea.hbm %s1400_s3, %s689_s10 }
 0x2a8   : > { %s477_s23 = sshll.u32 %s329_s25, 4  ;;  %s456_s27 = scalar_lea.sflag [#allocation4], %s1275_s26  ;;  %s1344_s23 = int_to_ptr.vmem [resolvable:$true] %s477_s23 }
 0x2a9   : > { %s927_s13 = scalar_lea.vmem %s1344_s23, 128  ;;  %s1041_s21 = smov [#allocation8]  }
 0x2aa   : > { %p928_p8 = scmp.ne.s32.totalorder %s1344_s23, %s927_s13  ;;  %s931_s6 = sshll.u32 %s1041_s21, 4  ;;  %s932_s6 = int_to_ptr.vmem [resolvable:$false] %s931_s6 }
 0x2ab   : > { %s933_s10 = scalar_lea.vmem %s932_s6, 256  ;;  %p934_p13 = scmp.lt.s32.totalorder %s1344_s23, %s932_s6 }
 0x2ac   : > { %p929_p9 = pnand %p928_p8, %p1434_p10  ;;  %p935_p12 = scmp.lt.s32.totalorder %s933_s10, %s927_s13 }
 0x2ae   : > { %p930_p11 = pneg %p929_p9  ;;  %p936_p6 = por %p935_p12, %p934_p13 }
 0x2b0   : > { %p937_p5 = pnand %p936_p6, %p930_p11 }
 0x2d2   : > { %v445_v24 = vpop.f32.mrb[0].mxu1 }
 0x2d3   : > { %v453_v25 = vmul.f32 %v808_v22, %v445_v24  ;;  %v708_v26 = vpop.f32.mrb[1].mxu1 }
 0x2d4   : > { %v448_v27 = vpop.f32.mrb[2].mxu1 }
 0x2d5   : > { %v709_v28 = vpop.f32.mrb[3].mxu1  ;;  %454 = vst.msk [vmem:[%s329_s25] sm:$0xff] %vm345_vm1, %v453_v25 }
 0x2d6   : > { %940 = shalt.err (!%p937_p5)
}
 0x2d7   : > { %s941_s26 = scalar_lea.hbm %s1342_s12, 128  ;;  %s945_s19 = scalar_lea.hbm %s1400_s3, 1024 }
 0x2d8   : > { %p942_p7 = scmp.ne.s32.totalorder %s1342_s12, %s941_s26  ;;  %p946_p4 = scmp.lt.u32.totalorder %s1342_s12, %s1400_s3 }
 0x2d9   : > { %p947_p1 = scmp.lt.u32.totalorder %s945_s19, %s941_s26  ;;  %p949_p8 = scmp.lt.u32.totalorder %s941_s26, %s1342_s12 }
 0x2da   : > { %p943_p3 = pnand %p942_p7, %p1434_p10 }
 0x2db   : > { %p948_p2 = por %p947_p1, %p946_p4 }
 0x2dc   : > { %p944_p0 = pneg %p943_p3 }
 0x2dd   : > { %p950_p9 = por %p949_p8, %p948_p2 }
 0x2df   : > { %p951_p11 = pnand %p950_p9, %p944_p0 }
 0x2e1   : > { %954 = shalt.err (!%p951_p11)
}
 0x2e2   : > { %716 = dma.vmem_to_hbm [thread:$0]  (%p1434_p10), %s1344_s23, 128, %s1342_s12, %s456_s27  }
 0x2e3 PF: > { %s1435_s11 = sld [smem:[#allocation15_spill]]  ;;  %s1436_s28 = sld [smem:[#allocation20_spill]] }
 0x2e4   : > { %p738_p13 = scmp.ge.s32.totalorder %s1033_s22, 2 }
 0x2e9   : > { %s505_s7 = sand.u32 1, %s1435_s11   ;;  %p1437_p12 = scmp.ne.s32.totalorder %s1436_s28, 0 }
 0x2ea   : > { %s506_s15 = scalar_lea.sflag [#allocation4], %s505_s7 }
 0x2eb   : > { %p731_p6 = pnand %p738_p13, %p1437_p12 }
 0x2ed   : > { %996 = dma.done.wait (!%p731_p6), %s506_s15, 128  }
 0x2ee   : > { %998 = vsyncadd (!%p731_p6), %s506_s15, 4294967168  ;;  %s515_s8 = scalar_lea.sflag [#allocation10], %s505_s7 }
 0x2ef   : > { %1000 = dma.done.wait (!%p731_p6), %s515_s8, 128  }
 0x2f0   : > { %1002 = vsyncadd (!%p731_p6), %s515_s8, 4294967168  ;;  %s27_s22 = sadd.s32 1, %s1033_s22   ;;  %s1438_s5 = sld [smem:[#allocation21_spill]] }
 0x2f1   : > { %p24_p5 = scmp.ge.s32.totalorder %s27_s22, 10   ;;  %s1439_s18 = sld [smem:[#allocation16_spill]] }
 0x2f2   : > { %s1440_s19 = sld [smem:[#allocation17_spill]]  ;;  %s1441_s20 = sld [smem:[#allocation18_spill]] }
 0x2f3   : > { %s1442_s21 = sld [smem:[#allocation19_spill]]  ;;  %s1443_s15 = smov %s1009_s16 }
 0x2f4   : > { %s1444_s16 = smov %s1013_s17  ;;  %26 = sbr.rel (!%p24_p5) target bundleno = 13 (0xd), region = 118 }
 0x2f6   : > { %s1445_s17 = smov %s1438_s5 }
 0x2fb   :  { %520 = vsyncpa [#allocation3], 1 }
 0x2fc   :  { %522 = vsyncpa [#allocation3 + $0x1], 1 }
 0x2fd   :  { %523 = vsyncpa [#allocation6], 1 }
 0x2fe   :  { %525 = vsyncpa [#allocation6 + $0x1], 1 }
 0x2ff   :  { %526 = vsyncpa [#allocation4], 1 }
 0x300   :  { %528 = vsyncpa [#allocation4 + $0x1], 1 }
 0x301   :  { %529 = vsyncpa [#allocation10], 1 }
 0x302   :  { %531 = vsyncpa [#allocation10 + $0x1], 1 }

</bundles_post_ra>
